<compile_context>
chip_gen: v7x
topology: tpu7x:2x2x1
jax: 0.10.0
libtpu: 0.0.40
codegen_flags: <defaults>
</compile_context>

<pallas_src>
import jax
import jax.numpy as jnp
from jax.experimental import pallas as pl
from jax.experimental.pallas import tpu as pltpu


def _round_up(x, m):
    return (x + m - 1) // m * m


def _padded_dims(d_in, hidden, out_flat):
    d_in_p = _round_up(d_in, 128)
    hidden_p = _round_up(hidden, 128)
    out128 = _round_up(out_flat, 128)
    # Largest column tile (<= 1024) that divides the 128-padded output width,
    # so real shapes (e.g. 77*1024) need no extra padding.
    tn = next((c for c in (1024, 512, 256, 128) if out128 % c == 0), 512)
    out_flat_p = _round_up(out_flat, tn)
    return d_in_p, hidden_p, out_flat_p, tn


def _pad_mat(a, rows, cols, dtype):
    """Zero-pad / cast a 2-D array to (rows, cols) in `dtype`.
    Static no-op when already prepared -> zero HBM traffic per call."""
    if a.shape == (rows, cols) and a.dtype == dtype:
        return a
    return jnp.zeros((rows, cols), dtype).at[:a.shape[0], :a.shape[1]].set(
        a.astype(dtype))


def _pad_row(v, cols, dtype):
    v2 = v.reshape(1, -1)
    if v2.shape == (1, cols) and v2.dtype == dtype:
        return v2
    return jnp.zeros((1, cols), dtype).at[:, :v2.shape[1]].set(v2.astype(dtype))


def _vmem_cap_bytes():
    # Generation-aware ceiling (~3/4 of physical VMEM: ~96 MiB on v5e/v6e,
    # ~48 MiB on v7x). Conservative fallback if unqueryable.
    try:
        cap = int(pltpu.get_tpu_info().vmem_capacity_bytes)
    except Exception:
        cap = 64 * 1024 * 1024
    return max(cap * 3 // 4, 32 * 1024 * 1024)


def _vmem_limit(need_bytes):
    cap = _vmem_cap_bytes()
    limit = max(int(need_bytes * 3 // 2), 32 * 1024 * 1024)
    limit = min(limit, cap)
    return int(max(limit, need_bytes))  # never clamp below the true need


# ----------------------------- kernels ------------------------------------


def _linear1_relu_kernel(x_ref, w1_ref, b1_ref, h_ref):
    h = jnp.dot(x_ref[...], w1_ref[...], preferred_element_type=jnp.float32)
    h = jnp.maximum(h + b1_ref[...], 0.0)
    # Dropout(p=0.1) is identity at inference time.
    h_ref[...] = h.astype(h_ref.dtype)


def _linear2_kernel(h_ref, w2_ref, b2_ref, o_ref):
    y = jnp.dot(h_ref[...], w2_ref[...], preferred_element_type=jnp.float32)
    o_ref[...] = (y + b2_ref[...]).astype(o_ref.dtype)


# ----------------------------- wrapper ------------------------------------


def prepare_mapping_params(w1, b1, w2, b2, *, max_length, output_dim,
                           compute_dtype=jnp.bfloat16):
    """One-time (model-load) pad + cast of the weights so the per-call hot
    path does zero weight copies in HBM."""
    d_in = w1.shape[0]
    hidden = max(w1.shape[1], w2.shape[0])
    out_flat = max_length * output_dim
    d_in_p, hidden_p, out_flat_p, _ = _padded_dims(d_in, hidden, out_flat)
    cdt = jnp.dtype(compute_dtype)
    return (_pad_mat(w1, d_in_p, hidden_p, cdt),
            _pad_row(b1, hidden_p, jnp.float32),
            _pad_mat(w2, hidden_p, out_flat_p, cdt),
            _pad_row(b2, out_flat_p, jnp.float32))


def mapping_model_forward(x, w1, b1, w2, b2, *, max_length, output_dim,
                          compute_dtype=jnp.bfloat16):
    """x: (B, input_dim); w1: (input_dim, 2*output_dim); b1: (2*output_dim,)
       w2: (2*output_dim, max_length*output_dim); b2: (max_length*output_dim,)
       (weights may be pre-padded/cast via prepare_mapping_params)
       returns (B, max_length, output_dim)"""
    B, d_in = x.shape
    hidden = max(w1.shape[1], w2.shape[0])
    out_flat = max_length * output_dim
    out_dtype = x.dtype
    cdt = jnp.dtype(compute_dtype)
    c_itm = cdt.itemsize
    o_itm = jnp.dtype(out_dtype).itemsize

    d_in_p, hidden_p, out_flat_p, tn = _padded_dims(d_in, hidden, out_flat)

    # Batch tile: largest tile (<= 1024) that divides the 8-padded batch. For
    # any realistic batch this keeps num_i == 1, so both h and every w2 column
    # tile are DMA'd exactly once in stage 2.
    B_p = _round_up(max(B, 1), 8)
    tm = next(c for c in (1024, 512, 256, 128, 64, 32, 16, 8) if B_p % c == 0)
    num_i = B_p // tm
    num_j = out_flat_p // tn

    # Operand preparation: static no-ops for pre-prepared weights; x is tiny.
    xp = _pad_mat(x, B_p, d_in_p, cdt)
    w1p = _pad_mat(w1, d_in_p, hidden_p, cdt)
    b1p = _pad_row(b1, hidden_p, jnp.float32)
    w2p = _pad_mat(w2, hidden_p, out_flat_p, cdt)
    b2p = _pad_row(b2, out_flat_p, jnp.float32)

    # ---------------- stage 1: h = relu(x @ w1 + b1) -----------------------
    flops1 = 2 * B_p * d_in_p * hidden_p
    bytes1 = ((B_p * d_in_p + d_in_p * hidden_p + B_p * hidden_p) * c_itm
              + hidden_p * 4)
    need1 = (2 * (tm * d_in_p + d_in_p * hidden_p + tm * hidden_p) * c_itm
             + 2 * hidden_p * 4)

    h = pl.pallas_call(
        _linear1_relu_kernel,
        out_shape=jax.ShapeDtypeStruct((B_p, hidden_p), cdt),
        grid=(num_i,),
        in_specs=[
            pl.BlockSpec((tm, d_in_p), lambda i: (i, 0)),
            pl.BlockSpec((d_in_p, hidden_p), lambda i: (0, 0)),   # resident
            pl.BlockSpec((1, hidden_p), lambda i: (0, 0)),        # resident
        ],
        out_specs=pl.BlockSpec((tm, hidden_p), lambda i: (i, 0)),
        compiler_params=pltpu.CompilerParams(
            dimension_semantics=("parallel",),
            vmem_limit_bytes=_vmem_limit(need1)),
        cost_estimate=pl.CostEstimate(flops=int(flops1), transcendentals=0,
                                      bytes_accessed=int(bytes1)),
    )(xp, w1p, b1p)

    # ---------------- stage 2: y = h @ w2 + b2 ------------------------------
    # Grid order (j outer, i inner): each w2 / b2 column tile is DMA'd exactly
    # once; h is re-fetched per j only when the batch spans multiple tiles.
    h_refetch = 1 if num_i == 1 else num_j
    flops2 = 2 * B_p * hidden_p * out_flat_p
    bytes2 = (hidden_p * out_flat_p * c_itm + out_flat_p * 4
              + h_refetch * B_p * hidden_p * c_itm
              + B_p * out_flat_p * o_itm)
    need2 = 2 * ((tm * hidden_p + hidden_p * tn) * c_itm + tn * 4
                 + tm * tn * o_itm)

    y_flat = pl.pallas_call(
        _linear2_kernel,
        out_shape=jax.ShapeDtypeStruct((B_p, out_flat_p), out_dtype),
        grid=(num_j, num_i),
        in_specs=[
            pl.BlockSpec((tm, hidden_p), lambda j, i: (i, 0)),     # h
            pl.BlockSpec((hidden_p, tn), lambda j, i: (0, j)),     # w2 streamed once
            pl.BlockSpec((1, tn), lambda j, i: (0, j)),            # b2
        ],
        out_specs=pl.BlockSpec((tm, tn), lambda j, i: (i, j)),     # lane-dense
        compiler_params=pltpu.CompilerParams(
            dimension_semantics=("parallel", "parallel"),
            vmem_limit_bytes=_vmem_limit(need2)),
        cost_estimate=pl.CostEstimate(flops=int(flops2), transcendentals=0,
                                      bytes_accessed=int(bytes2)),
    )(h, w2p, b2p)

    if B_p != B or out_flat_p != out_flat:
        y_flat = y_flat[:B, :out_flat]
    return y_flat.reshape(B, max_length, output_dim)


# ----------------------------- demo / test ---------------------------------

if __name__ == "__main__":
    # Small shapes consistent with the module structure
    # (hidden = 2*output_dim, out_flat = max_length*output_dim).
    batch = 4
    input_dim = 64
    output_dim = 128
    max_length = 8

    hidden = 2 * output_dim
    out_flat = max_length * output_dim

    key = jax.random.PRNGKey(0)
    kx, kw1, kb1, kw2, kb2 = jax.random.split(key, 5)

    x = jax.random.normal(kx, (batch, input_dim), jnp.float32)
    bound1 = 1.0 / jnp.sqrt(input_dim)
    w1 = jax.random.uniform(kw1, (input_dim, hidden), jnp.float32, -bound1, bound1)
    b1 = jax.random.uniform(kb1, (hidden,), jnp.float32, -bound1, bound1)
    bound2 = 1.0 / jnp.sqrt(hidden)
    w2 = jax.random.uniform(kw2, (hidden, out_flat), jnp.float32, -bound2, bound2)
    b2 = jax.random.uniform(kb2, (out_flat,), jnp.float32, -bound2, bound2)

    # One-time weight preparation (pad + bf16 cast) OUTSIDE the hot path.
    w1p, b1p, w2p, b2p = prepare_mapping_params(
        w1, b1, w2, b2, max_length=max_length, output_dim=output_dim)

    y = mapping_model_forward(x, w1p, b1p, w2p, b2p,
                              max_length=max_length, output_dim=output_dim)
    y = jax.block_until_ready(y)

    # Reference in plain JAX (f32). The kernel uses bf16 MXU inputs (including
    # the intermediate h) with f32 accumulation, hence the looser tolerance.
    h_ref = jnp.maximum(x @ w1 + b1, 0.0)
    y_ref = (h_ref @ w2 + b2).reshape(batch, max_length, output_dim)

    assert y.shape == (batch, max_length, output_dim)
    err = float(jnp.max(jnp.abs(y - y_ref)))
    assert jnp.allclose(y, y_ref, atol=2e-2, rtol=2e-2), (
        "max abs diff = %f" % err)

    print("KERNEL_OK")
</pallas_src>

<mosaic_0001>
module attributes {stable_mosaic.version = 11 : i64} {
  func.func @_linear1_relu_kernel(%arg0: i32, %arg1: memref<8x128xbf16, #tpu.memory_space<vmem>>, %arg2: memref<128x256xbf16, #tpu.memory_space<vmem>>, %arg3: memref<1x256xf32, #tpu.memory_space<vmem>>, %arg4: memref<8x256xbf16, #tpu.memory_space<vmem>>) attributes {dimension_semantics = [#tpu.dimension_semantics<parallel>], iteration_bounds = array<i64: 1>, scalar_prefetch = 0 : i64, scratch_operands = 0 : i64, tpu.core_type = #tpu.core_type<tc>, window_params = [{transform_indices = @transform_0, window_bounds = array<i64: 8, 128>}, {pipeline_mode = #tpu.pipeline_mode<synchronous>, transform_indices = @transform_1, window_bounds = array<i64: 128, 256>}, {pipeline_mode = #tpu.pipeline_mode<synchronous>, transform_indices = @transform_2, window_bounds = array<i64: 1, 256>}, {transform_indices = @transform_3, window_bounds = array<i64: 8, 256>}]} {
    %c0 = arith.constant 0 : index
    %c0_0 = arith.constant 0 : index
    %0 = vector.load %arg1[%c0, %c0_0] : memref<8x128xbf16, #tpu.memory_space<vmem>>, vector<8x128xbf16>
    %c0_1 = arith.constant 0 : index
    %c0_2 = arith.constant 0 : index
    %1 = vector.load %arg2[%c0_1, %c0_2] : memref<128x256xbf16, #tpu.memory_space<vmem>>, vector<128x256xbf16>
    %cst = arith.constant dense<0.000000e+00> : vector<8x256xf32>
    %2 = tpu.matmul %0, %1, %cst {dimension_numbers = #tpu.dot_dimension_numbers<[1], [0], [0], [1], [0, 0, 1, 1], [], []>} : vector<8x128xbf16>, vector<128x256xbf16>, vector<8x256xf32> -> vector<8x256xf32>
    %c0_3 = arith.constant 0 : index
    %c0_4 = arith.constant 0 : index
    %3 = vector.load %arg3[%c0_3, %c0_4] : memref<1x256xf32, #tpu.memory_space<vmem>>, vector<1x256xf32>
    %4 = vector.broadcast %3 : vector<1x256xf32> to vector<8x256xf32>
    %5 = arith.addf %2, %4 : vector<8x256xf32>
    %cst_5 = arith.constant 0.000000e+00 : f32
    %6 = vector.broadcast %cst_5 : f32 to vector<8x256xf32>
    %7 = arith.maximumf %5, %6 : vector<8x256xf32>
    %8 = arith.truncf %7 : vector<8x256xf32> to vector<8x256xbf16>
    %c0_6 = arith.constant 0 : index
    %c0_7 = arith.constant 0 : index
    %9 = vector.load %arg4[%c0_6, %c0_7] : memref<8x256xbf16, #tpu.memory_space<vmem>>, vector<8x256xbf16>
    tpu.vector_store %arg4[%c0_6, %c0_7], %8 {strides = array<i32>} : memref<8x256xbf16, #tpu.memory_space<vmem>>, vector<8x256xbf16>,
    return
  }
  func.func @transform_0(%arg0: i32) -> (i32, i32) {
    %c0_i32 = arith.constant 0 : i32
    %c0_i32_0 = arith.constant 0 : i32
    return %arg0, %c0_i32 : i32, i32
  }
  func.func @transform_1(%arg0: i32) -> (i32, i32) {
    %c0_i32 = arith.constant 0 : i32
    %c0_i32_0 = arith.constant 0 : i32
    %c0_i32_1 = arith.constant 0 : i32
    return %c0_i32, %c0_i32_0 : i32, i32
  }
  func.func @transform_2(%arg0: i32) -> (i32, i32) {
    %c0_i32 = arith.constant 0 : i32
    %c0_i32_0 = arith.constant 0 : i32
    %c0_i32_1 = arith.constant 0 : i32
    return %c0_i32, %c0_i32_0 : i32, i32
  }
  func.func @transform_3(%arg0: i32) -> (i32, i32) {
    %c0_i32 = arith.constant 0 : i32
    %c0_i32_0 = arith.constant 0 : i32
    return %arg0, %c0_i32 : i32, i32
  }
}

</mosaic_0001>

<bundles_post_ra>
// kernel: tpu_custom_call.1
= control target key start
LH: loop header
LB: loop body
LE: loop exit
PB: predicated region body
PF: predicated region fallthrough
CT: control target
= control target key end

     0   :  { %8 = vsyncpa [#allocation3], 0  ;;  %s411_s0 = inlined_call_operand.hbm [shape: bf16[8,128], index: 0, kind: input, shape index: {}]   ;;  %s412_s1 = inlined_call_operand.hbm [shape: bf16[128,256], index: 1, kind: input, shape index: {}]   ;;  %s413_s2 = inlined_call_operand.vmem [shape: f32[1,256], index: 2, kind: input, shape index: {}]   ;;  %s414_s3 = inlined_call_operand.hbm [shape: bf16[8,256], index: 3, kind: output, shape index: {}]  }
   0x1   :  { %9 = vsyncpa [#allocation6], 0 }
   0x2   :  { %10 = vsyncpa [#allocation4], 0  ;;  %s339_s12 = smov [#allocation2]   ;;  %s340_s14 = smov [#allocation5]  }
   0x3   :  { %s17_s13 = sshll.u32 %s339_s12, 4  ;;  %s26_s15 = sshll.u32 %s340_s14, 4  ;;  %s18_s13 = int_to_ptr.vmem [resolvable:$true] %s17_s13  ;;  %s365_s15 = int_to_ptr.vmem [resolvable:$true] %s26_s15 }
   0x4   :  { %s267_s18 = scalar_lea.hbm %s411_s0, 64 }
   0x5   :  { %p268_p0 = scmp.ne.s32.totalorder %s411_s0, %s267_s18  ;;  %p271_p1 = scmp.lt.u32.totalorder %s267_s18, %s411_s0 }
   0x7   :  { %p273_p2 = pnand %p271_p1, %p268_p0 }
   0x9   :  { %276 = shalt.err (!%p273_p2)
}
   0xa   :  { %s277_s23 = scalar_lea.vmem %s18_s13, 64  ;;  %p282_p4 = scmp.lt.s32.totalorder %s18_s13, %s18_s13 }
   0xb   :  { %p278_p3 = scmp.ne.s32.totalorder %s18_s13, %s277_s23  ;;  %p283_p5 = scmp.lt.s32.totalorder %s277_s23, %s277_s23 }
   0xd   :  { %p284_p6 = por %p283_p5, %p282_p4 }
   0xf   :  { %p285_p7 = pnand %p284_p6, %p278_p3 }
  0x11   :  { %288 = shalt.err (!%p285_p7)
}
  0x12   :  { %20 = dma.hbm_to_vmem [thread:$0]  %s411_s0, 64, %s18_s13, [#allocation3]  }
  0x13   :  { %s289_s28 = scalar_lea.hbm %s412_s1, 2048 }
  0x14   :  { %p290_p8 = scmp.ne.s32.totalorder %s412_s1, %s289_s28  ;;  %p293_p9 = scmp.lt.u32.totalorder %s289_s28, %s412_s1 }
  0x16   :  { %p295_p10 = pnand %p293_p9, %p290_p8 }
  0x18   :  { %298 = shalt.err (!%p295_p10)
}
  0x19   :  { %s299_s6 = scalar_lea.vmem %s365_s15, 2048  ;;  %p304_p12 = scmp.lt.s32.totalorder %s365_s15, %s365_s15 }
  0x1a   :  { %p300_p11 = scmp.ne.s32.totalorder %s365_s15, %s299_s6  ;;  %p305_p13 = scmp.lt.s32.totalorder %s299_s6, %s299_s6 }
  0x1c   :  { %p306_p0 = por %p305_p13, %p304_p12 }
  0x1e   :  { %p307_p1 = pnand %p306_p0, %p300_p11 }
  0x20   :  { %310 = shalt.err (!%p307_p1)
}
  0x21   :  { %s341_s0 = smov 128   ;;  %s342_s7 = smov 8  }
  0x22   :  { %32 = dma.hbm_to_vmem [thread:$0]  %s412_s1, 2048, %s365_s15, [#allocation6], %s341_s0, %s341_s0, %s342_s7  }
  0x23   :  { %333 = dma.done.wait [#allocation3], 64  }
  0x24   :  { %334 = vsyncadd [#allocation3], 4294967232 }
  0x25   :  { %335 = dma.done.wait [#allocation6], 2048  }
  0x26   :  { %336 = vsyncadd [#allocation6], 4294965248  ;;  %v343_v0 = vmov 0   ;;  %v243_v1 = vld [vmem:[#allocation5 + $0x4] ss:$8 sps:$4 sm:$0xff]   ;;  %v61_v18 = vlaneseq  ;;  %s344_s11 = smov [#allocation7]  }
  0x27   :  { %183 = vmatprep.mubr.bf16.mxu0 %v343_v0  ;;  %v245_v2 = vld [vmem:[#allocation5] ss:$8 sps:$4 sm:$0xff]   ;;  %151 = vmatprep.subr.bf16.mxu0 %v243_v1  ;;  %v246_v3 = vld [vmem:[#allocation5 + $0x14] ss:$8 sps:$4 sm:$0xff]   ;;  %v248_v4 = vld [vmem:[#allocation5 + $0x10] ss:$8 sps:$4 sm:$0xff]  }
  0x28   :  { %152 = vmatpush1.bf16.msra.mxu0 %v245_v2  ;;  %v249_v5 = vld [vmem:[#allocation5 + $0x24] ss:$8 sps:$4 sm:$0xff]   ;;  %v251_v6 = vld [vmem:[#allocation5 + $0x20] ss:$8 sps:$4 sm:$0xff]   ;;  %v252_v7 = vld [vmem:[#allocation5 + $0x34] ss:$8 sps:$4 sm:$0xff]  }
  0x29   :  { %153 = vmatprep.subr.bf16.mxu0 %v246_v3  ;;  %v254_v8 = vld [vmem:[#allocation5 + $0x30] ss:$8 sps:$4 sm:$0xff]   ;;  %v255_v9 = vld [vmem:[#allocation5 + $0x44] ss:$8 sps:$4 sm:$0xff]   ;;  %v257_v10 = vld [vmem:[#allocation5 + $0x40] ss:$8 sps:$4 sm:$0xff]  }
  0x2a   :  { %v258_v11 = vld [vmem:[#allocation5 + $0x54] ss:$8 sps:$4 sm:$0xff]   ;;  %v260_v12 = vld [vmem:[#allocation5 + $0x50] ss:$8 sps:$4 sm:$0xff]   ;;  %v261_v13 = vld [vmem:[#allocation5 + $0x64] ss:$8 sps:$4 sm:$0xff]  }
  0x2b   :  { %v263_v14 = vld [vmem:[#allocation5 + $0x60] ss:$8 sps:$4 sm:$0xff]   ;;  %v264_v15 = vld [vmem:[#allocation5 + $0x74] ss:$8 sps:$4 sm:$0xff]   ;;  %v266_v16 = vld [vmem:[#allocation5 + $0x70] ss:$8 sps:$4 sm:$0xff]  }
  0x2c   :  { %154 = vmatpush1.bf16.msra.mxu0 %v248_v4  ;;  %v42_v17 = vld [vmem:[#allocation2] sm:$0xf]  ;;  %v62_v19 = vshrl.u32 %v61_v18, 7  ;;  %s209_s12 = sshll.u32 %s344_s11, 4  ;;  %s210_s12 = int_to_ptr.vmem [resolvable:$true] %s209_s12 }
  0x2d   :  { %155 = vmatprep.subr.bf16.mxu0 %v249_v5  ;;  %v59_v21 = vld [vmem:[%s413_s2] sm:$0x3]  ;;  %s311_s13 = scalar_lea.vmem %s210_s12, 128  ;;  %p316_p3 = scmp.lt.s32.totalorder %s210_s12, %s210_s12 }
  0x2e   :  { %v63_v20 = vsub.s32 0, %v62_v19  ;;  %v67_v22 = vsub.s32 1, %v62_v19  ;;  %p312_p2 = scmp.ne.s32.totalorder %s210_s12, %s311_s13  ;;  %p317_p4 = scmp.lt.s32.totalorder %s311_s13, %s311_s13 }
  0x30   :  { %156 = vmatpush1.bf16.msra.mxu0 %v251_v6  ;;  %v64_v23 = vrot.slane %v59_v21, %v63_v20  ;;  %v68_v24 = vrot.slane %v59_v21, %v67_v22  ;;  %p318_p5 = por %p317_p4, %p316_p3 }
  0x31   :  { %157 = vmatprep.subr.bf16.mxu0 %v252_v7 }
  0x32   :  { %p319_p6 = pnand %p318_p5, %p312_p2 }
  0x34   :  { %158 = vmatpush1.bf16.msra.mxu0 %v254_v8 }
  0x35   :  { %159 = vmatprep.subr.bf16.mxu0 %v255_v9 }
  0x38   :  { %160 = vmatpush1.bf16.msra.mxu0 %v257_v10 }
  0x39   :  { %161 = vmatprep.subr.bf16.mxu0 %v258_v11 }
  0x3c   :  { %162 = vmatpush1.bf16.msra.mxu0 %v260_v12 }
  0x3d   :  { %163 = vmatprep.subr.bf16.mxu0 %v261_v13 }
  0x40   :  { %164 = vmatpush1.bf16.msra.mxu0 %v263_v14 }
  0x41   :  { %165 = vmatprep.subr.bf16.mxu0 %v264_v15 }
  0x44   :  { %166 = vmatpush1.bf16.msra.mxu0 %v266_v16 }
  0x47   :  { %184 = vmatmul.mubr.bf16.vlgmr.msra.gmra.mrb[0].mxu0 %v42_v17 }
 0x11a   :  { %v185_v25 = vpop.f32.mrb[0].mxu0 }
 0x11b   :  { %v186_v26 = vadd.f32 %v185_v25, %v64_v23  ;;  %v187_v27 = vpop.f32.mrb[1].mxu0 }
 0x11c   :  { %v188_v28 = vadd.f32 %v187_v27, %v68_v24  ;;  %v189_v29 = vpop.f32.mrb[2].mxu0 }
 0x11d   :  { %v192_v30 = vmax.f32 %v186_v26, 0.0  ;;  %v190_v31 = vpop.f32.mrb[3].mxu0 }
 0x11e   :  { %v193_v32 = vmax.f32 %v188_v28, 0.0 }
 0x120   :  { %v236_v33 = vpack.c.bf16 %v193_v32, %v192_v30 }
 0x122   :  { %202 = vst [vmem:[#allocation7] sm:$0xff] %v236_v33 }
 0x123   :  { %322 = shalt.err (!%p319_p6)
}
 0x124   :  { %s323_s15 = scalar_lea.hbm %s414_s3, 128 }
 0x125   :  { %p324_p7 = scmp.ne.s32.totalorder %s414_s3, %s323_s15  ;;  %p327_p8 = scmp.lt.u32.totalorder %s323_s15, %s414_s3 }
 0x127   :  { %p329_p9 = pnand %p327_p8, %p324_p7 }
 0x129   :  { %332 = shalt.err (!%p329_p9)
}
 0x12a   :  { %212 = dma.vmem_to_hbm [thread:$0]  %s210_s12, 128, %s414_s3, [#allocation4]  }
 0x12b   :  { %337 = dma.done.wait [#allocation4], 128  }
 0x12c   :  { %338 = vsyncadd [#allocation4], 4294967168 }
 0x12d   :  { %216 = vsyncpa [#allocation3], 1 }
 0x12e   :  { %217 = vsyncpa [#allocation6], 1 }
 0x12f   :  { %218 = vsyncpa [#allocation4], 1 }

</bundles_post_ra>
